<compile_context>
chip_gen: v7x
topology: tpu7x:2x2x1
jax: 0.10.0
libtpu: 0.0.40
codegen_flags: <defaults>
</compile_context>

<pallas_src>
import jax
import jax.numpy as jnp
from jax.experimental import pallas as pl
from jax.experimental.pallas import tpu as pltpu

EPS = 1e-5


def _round_up(x, m):
    return ((x + m - 1) // m) * m


def _full_spec(shape):
    # Whole-array block (block == full array dims satisfies the (8,128) rule).
    return pl.BlockSpec(shape, lambda i: (0,) * len(shape))


# ---------------------------------------------------------------------------
# The single fused kernel
# ---------------------------------------------------------------------------
def make_fused_kernel(H, prep):
    L = H
    W = prep['W']
    k = prep['k']
    CMAX = prep['CMAX']
    REG = k * CMAX                      # columns per ping-pong staging region
    block_cfg = prep['block_cfg']
    boffs = prep['block_offs']
    out_size = prep['out_size']
    c_last = prep['c_last']
    lin_w_off = prep['lin_w_off']
    lin_b_row = prep['lin_b_row']

    f32, bf16 = jnp.float32, jnp.bfloat16

    def kernel(x_ref, m1_ref, m2_ref, w_ref, b_ref, o_ref, stage_ref):
        # Zero the tap-staging scratch once: lanes that are only ever multiplied by
        # zero weight rows must never hold NaN/Inf garbage from stale VMEM.
        stage_ref[...] = jnp.zeros_like(stage_ref)

        # ---- Stage 1: (1x1 Conv2d -> BN -> ReLU) x 2 as two whole-slab matmuls.
        h = jnp.dot(x_ref[...].astype(bf16), m1_ref[...],
                    preferred_element_type=f32)
        h = jnp.maximum(h + b_ref[pl.ds(0, 1), :], 0.0)          # (H, W*64) f32
        z = jnp.dot(h.astype(bf16), m2_ref[...], preferred_element_type=f32)
        z = jnp.maximum(z + b_ref[pl.ds(1, 1), pl.ds(0, 1)], 0.0)  # (L, W) f32

        # ---- Tap staging: write `val` once per tap with its causal shift
        # pre-applied so a single contiguous (L, k*CMAX) load feeds one matmul.
        def stage(val, c, d, region):
            base = region * REG
            for j in range(k):
                s = (k - 1 - j) * d                    # static shift into the past
                col = base + j * CMAX
                if s > 0:                              # causal zero-padding rows
                    stage_ref[pl.ds(0, s), pl.ds(col, c)] = jnp.zeros((s, c), f32)
                stage_ref[pl.ds(s, L), pl.ds(col, c)] = val

        def conv(region, w_off, c_out, b_row):
            zcat = stage_ref[pl.ds(0, L), pl.ds(region * REG, REG)]
            wcat = w_ref[pl.ds(w_off, REG), pl.ds(0, c_out)]
            out = jnp.dot(zcat.astype(bf16), wcat, preferred_element_type=f32)
            return out + b_ref[pl.ds(b_row, 1), pl.ds(0, c_out)]

        # ---- Stage 2: TemporalConvNet blocks (activations never leave VMEM) ----
        region = 0
        stage(z, W, block_cfg[0][2], region)           # taps for block 0's conv1
        for bi, (c_in, c_out, d, has_down) in enumerate(block_cfg):
            bo = boffs[bi]
            h1 = jnp.maximum(conv(region, bo['w1'], c_out, bo['b1']), 0.0)
            if has_down:
                dw = w_ref[pl.ds(bo['dw'], c_in), pl.ds(0, c_out)]
                res = (jnp.dot(z.astype(bf16), dw, preferred_element_type=f32)
                       + b_ref[pl.ds(bo['db'], 1), pl.ds(0, c_out)])
            else:
                res = z                                # identity residual: no matmul
            region = 1 - region                        # ping-pong staging region
            stage(h1, c_out, d, region)
            h2 = jnp.maximum(conv(region, bo['w2'], c_out, bo['b2']), 0.0)
            z = jnp.maximum(h2 + res, 0.0)
            if bi + 1 < len(block_cfg):
                region = 1 - region
                stage(z, c_out, block_cfg[bi + 1][2], region)

        # ---- Stage 3: Linear on the last time step (no extra DMA / launch) ----
        lw = w_ref[pl.ds(lin_w_off, c_last), pl.ds(0, out_size)]
        o_ref[...] = (jnp.dot(z[L - 1:L, :].astype(bf16), lw,
                              preferred_element_type=f32)
                      + b_ref[pl.ds(lin_b_row, 1), pl.ds(0, out_size)])

    return kernel


# ---------------------------------------------------------------------------
# One-time parameter preparation: BN folding, block-diagonal embedding of the
# 1x1 convs, tap-fused conv weights, bf16 weight slab + f32 bias slab packing.
# ---------------------------------------------------------------------------
def prepare_params(params, kernel_size, W):
    k = kernel_size
    C_in = int(params['c1_w'].shape[1])
    C1 = int(params['c1_w'].shape[0])              # stage-1 hidden channels (64)

    # ---- BatchNorm folding (eval: running stats) into the 1x1 convs ----
    g1, be1, m1, v1 = params['bn1']
    s1 = g1 / jnp.sqrt(v1 + EPS)
    w1f = params['c1_w'] * s1[:, None]             # (C1, C_in)
    b1f = (params['c1_b'] - m1) * s1 + be1         # (C1,)
    g2, be2, m2, v2 = params['bn2']
    s2 = g2 / jnp.sqrt(v2 + EPS)
    w2f = params['c2_w'] * s2[:, None]             # (1, C1)
    b2f = (params['c2_b'] - m2) * s2 + be2         # (1,)

    # ---- Stage-1 block-diagonal embeddings: M1[(j*C_in+c),(J*C1+o)] = w1f[o,c]*d(j,J)
    #      M2[(j*C1+o), J] = w2f[0,o]*d(j,J); output lands as (H, W), time on sublanes.
    eye = jnp.eye(W, dtype=jnp.float32)
    M1 = jnp.einsum('oc,jJ->jcJo', w1f, eye).reshape(W * C_in, W * C1)
    M2 = jnp.einsum('o,jJ->joJ', w2f[0], eye).reshape(W * C1, W)
    b1_row = jnp.tile(b1f, W)                      # (W*C1,) matches h's column order

    # ---- TCN block configuration ----
    block_cfg = []
    c_max, max_d = W, 1
    for blk in params['blocks']:
        c_out, c_in_b, _ = blk['w1'].shape
        d = int(blk['dilation'])
        block_cfg.append((int(c_in_b), int(c_out), d, blk['dw'] is not None))
        c_max = max(c_max, int(c_in_b), int(c_out))
        max_d = max(max_d, d)
    assert block_cfg[0][0] == W, \
        "TCN num_inputs (block 0 in-channels) must equal the spatial width W"
    CMAX = _round_up(c_max, 8)
    pad_max = (k - 1) * max_d
    out_size = int(params['lin_w'].shape[0])
    c_last = int(params['lin_w'].shape[1])
    SLABW = max(CMAX, _round_up(out_size, 8))

    # ---- bf16 weight slab (static row offsets, rows aligned to 16) ----
    wsegs, wrow = [], 0

    def add_w(a):
        nonlocal wrow
        off = wrow
        a = jnp.asarray(a, jnp.float32)
        a = jnp.pad(a, ((0, (-a.shape[0]) % 16), (0, SLABW - a.shape[1])))
        wsegs.append(a)
        wrow += a.shape[0]
        return off

    def wcat_of(w):                                # (c_out, c_in, k) -> (k*CMAX, c_out)
        c_out, c_in_b, _ = w.shape
        wt = jnp.transpose(w, (2, 1, 0))           # (k, c_in, c_out)
        wt = jnp.pad(wt, ((0, 0), (0, CMAX - c_in_b), (0, 0)))
        return wt.reshape(k * CMAX, c_out)

    # ---- f32 bias slab (one bias per row, column 0 aligned) ----
    BW = W * C1
    brows = []

    def add_b(vec):
        r = len(brows)
        v = jnp.asarray(vec, jnp.float32).reshape(1, -1)
        brows.append(jnp.pad(v, ((0, 0), (0, BW - v.shape[1]))))
        return r

    add_b(b1_row)                                  # row 0
    add_b(b2f)                                     # row 1

    block_offs = []
    for blk, (c_in_b, c_out, d, has_down) in zip(params['blocks'], block_cfg):
        bo = dict(w1=add_w(wcat_of(blk['w1'])), b1=add_b(blk['b1']),
                  w2=add_w(wcat_of(blk['w2'])), b2=add_b(blk['b2']),
                  dw=None, db=None)
        if has_down:
            bo['dw'] = add_w(blk['dw'].T)          # (c_in, c_out)
            bo['db'] = add_b(blk['db'])
        block_offs.append(bo)

    lin_w_off = add_w(params['lin_w'].T)           # (c_last, out_size)
    lin_b_row = add_b(params['lin_b'])

    return dict(
        M1=M1.astype(jnp.bfloat16), M2=M2.astype(jnp.bfloat16),
        wslab=jnp.concatenate(wsegs, axis=0).astype(jnp.bfloat16),
        bslab=jnp.concatenate(brows, axis=0),
        block_cfg=tuple(block_cfg), block_offs=tuple(block_offs),
        lin_w_off=lin_w_off, lin_b_row=lin_b_row,
        out_size=out_size, c_last=c_last,
        k=k, CMAX=CMAX, pad_max=pad_max, W=W, C_in=C_in)


# ---------------------------------------------------------------------------
# Forward = one tiny layout transpose + ONE pallas_call (5 inputs, 5 DMAs)
# ---------------------------------------------------------------------------
def stcn_forward(x, prep):
    n, C_in, H, W = x.shape
    assert n == 1, "STCN forward requires batch size 1 (because of .squeeze(0))"
    assert W == prep['W'] and C_in == prep['C_in']
    # NCHW (1,C,H,W) -> (H, W*C): one tiny HBM-side layout op so the stage-1
    # matmul puts time (H) directly on sublanes.
    x_r = jnp.transpose(x[0], (1, 2, 0)).reshape(H, W * C_in)

    inputs = [x_r, prep['M1'], prep['M2'], prep['wslab'], prep['bslab']]
    kernel = make_fused_kernel(H, prep)
    scratch_rows = _round_up(prep['pad_max'] + H, 8)
    scratch_cols = 2 * prep['k'] * prep['CMAX']    # two ping-pong tap regions

    return pl.pallas_call(
        kernel,
        out_shape=jax.ShapeDtypeStruct((1, prep['out_size']), jnp.float32),
        grid=(1,),
        in_specs=[_full_spec(a.shape) for a in inputs],
        out_specs=_full_spec((1, prep['out_size'])),
        scratch_shapes=[pltpu.VMEM((scratch_rows, scratch_cols), jnp.float32)],
        compiler_params=pltpu.CompilerParams(dimension_semantics=("arbitrary",)),
    )(*inputs)


# ---------------------------------------------------------------------------
# Parameter construction (deterministic, mimics the module's shapes/init)
# ---------------------------------------------------------------------------
def init_params(key, in_channels, input_size, num_channels, kernel_size, output_size):
    keys = iter(jax.random.split(key, 64))
    p = {}
    p['c1_w'] = 0.01 * jax.random.normal(next(keys), (64, in_channels), jnp.float32)
    p['c1_b'] = 0.01 * jax.random.normal(next(keys), (64,), jnp.float32)
    p['c2_w'] = 0.01 * jax.random.normal(next(keys), (1, 64), jnp.float32)
    p['c2_b'] = 0.01 * jax.random.normal(next(keys), (1,), jnp.float32)
    # BatchNorm default init (gamma, beta, running_mean, running_var)
    p['bn1'] = (jnp.ones((64,)), jnp.zeros((64,)), jnp.zeros((64,)), jnp.ones((64,)))
    p['bn2'] = (jnp.ones((1,)), jnp.zeros((1,)), jnp.zeros((1,)), jnp.ones((1,)))

    blocks = []
    c_in = input_size
    for i, c_out in enumerate(num_channels):
        d = 2 ** i
        w1 = 0.01 * jax.random.normal(next(keys), (c_out, c_in, kernel_size), jnp.float32)
        b1 = 0.01 * jax.random.normal(next(keys), (c_out,), jnp.float32)
        w2 = 0.01 * jax.random.normal(next(keys), (c_out, c_out, kernel_size), jnp.float32)
        b2 = 0.01 * jax.random.normal(next(keys), (c_out,), jnp.float32)
        if c_in != c_out:
            dw = 0.01 * jax.random.normal(next(keys), (c_out, c_in), jnp.float32)
            db = 0.01 * jax.random.normal(next(keys), (c_out,), jnp.float32)
        else:                      # downsample is None -> identity residual
            dw, db = None, None
        blocks.append(dict(w1=w1, b1=b1, w2=w2, b2=b2, dw=dw, db=db, dilation=d))
        c_in = c_out
    p['blocks'] = blocks
    p['lin_w'] = 0.01 * jax.random.normal(next(keys), (output_size, num_channels[-1]), jnp.float32)
    p['lin_b'] = 0.01 * jax.random.normal(next(keys), (output_size,), jnp.float32)
    return p


# ---------------------------------------------------------------------------
# Pure-JAX f32 reference (explicit padding / einsum) for in-script validation
# ---------------------------------------------------------------------------
def reference_forward(x, params, kernel_size):
    _, _, H, W = x.shape
    x0 = x[0]

    def bn(y, bnp):
        g, b, m, v = bnp
        return (y - m[:, None, None]) / jnp.sqrt(v + EPS)[:, None, None] \
            * g[:, None, None] + b[:, None, None]

    h = jnp.einsum('oc,chw->ohw', params['c1_w'], x0) + params['c1_b'][:, None, None]
    h = jnp.maximum(bn(h, params['bn1']), 0.0)
    h = jnp.einsum('oc,chw->ohw', params['c2_w'], h) + params['c2_b'][:, None, None]
    h = jnp.maximum(bn(h, params['bn2']), 0.0)        # (1, H, W)
    t = h[0].T                                        # (channels=W, time=H)

    def causal_conv(z, w, b, d):
        k = w.shape[-1]
        pad = (k - 1) * d
        zp = jnp.pad(z, ((0, 0), (pad, 0)))
        Lz = z.shape[1]
        out = jnp.zeros((w.shape[0], Lz), jnp.float32)
        for j in range(k):
            out = out + jnp.einsum('oc,cl->ol', w[:, :, j], zp[:, j * d: j * d + Lz])
        return out + b[:, None]

    for blk in params['blocks']:
        d = blk['dilation']
        h1 = jnp.maximum(causal_conv(t, blk['w1'], blk['b1'], d), 0.0)
        h2 = jnp.maximum(causal_conv(h1, blk['w2'], blk['b2'], d), 0.0)
        if blk['dw'] is None:
            res = t
        else:
            res = jnp.einsum('oc,cl->ol', blk['dw'], t) + blk['db'][:, None]
        t = jnp.maximum(h2 + res, 0.0)

    pred = t[:, -1] @ params['lin_w'].T + params['lin_b']
    return pred[None, :]


if __name__ == "__main__":
    in_channels, H, W = 4, 16, 16
    input_size = W                # TCN num_inputs must equal W (spatial width)
    num_channels = [32, 32]
    kernel_size = 2
    output_size = 8
    dropout = 0.2                 # identity at inference

    key = jax.random.PRNGKey(0)
    kx, kp = jax.random.split(key)
    x = jax.random.normal(kx, (1, in_channels, H, W), jnp.float32)
    params = init_params(kp, in_channels, input_size, num_channels, kernel_size, output_size)

    prep = prepare_params(params, kernel_size, W)   # BN folding + packing, done once

    pred = stcn_forward(x, prep)
    pred = jax.block_until_ready(pred)

    ref = reference_forward(x, params, kernel_size)
    assert pred.shape == (1, output_size), pred.shape
    assert jnp.allclose(pred, ref, atol=1e-3, rtol=1e-2), (pred, ref)

    print("KERNEL_OK")
</pallas_src>

<mosaic_0001>
module attributes {stable_mosaic.version = 11 : i64} {
  func.func @kernel(%arg0: i32, %arg1: memref<16x64xf32, #tpu.memory_space<vmem>>, %arg2: memref<64x1024xbf16, #tpu.memory_space<vmem>>, %arg3: memref<1024x16xbf16, #tpu.memory_space<vmem>>, %arg4: memref<304x32xbf16, #tpu.memory_space<vmem>>, %arg5: memref<8x1024xf32, #tpu.memory_space<vmem>>, %arg6: memref<1x8xf32, #tpu.memory_space<vmem>>, %arg7: memref<24x128xf32, #tpu.memory_space<vmem>>) attributes {dimension_semantics = [#tpu.dimension_semantics<arbitrary>], iteration_bounds = array<i64: 1>, scalar_prefetch = 0 : i64, scratch_operands = 1 : i64, tpu.core_type = #tpu.core_type<tc>, window_params = [{pipeline_mode = #tpu.pipeline_mode<synchronous>, transform_indices = @transform_0, window_bounds = array<i64: 16, 64>}, {pipeline_mode = #tpu.pipeline_mode<synchronous>, transform_indices = @transform_1, window_bounds = array<i64: 64, 1024>}, {pipeline_mode = #tpu.pipeline_mode<synchronous>, transform_indices = @transform_2, window_bounds = array<i64: 1024, 16>}, {pipeline_mode = #tpu.pipeline_mode<synchronous>, transform_indices = @transform_3, window_bounds = array<i64: 304, 32>}, {pipeline_mode = #tpu.pipeline_mode<synchronous>, transform_indices = @transform_4, window_bounds = array<i64: 8, 1024>}, {pipeline_mode = #tpu.pipeline_mode<synchronous>, transform_indices = @transform_5, window_bounds = array<i64: 1, 8>}]} {
    %cst = arith.constant 0.000000e+00 : f32
    %0 = vector.broadcast %cst : f32 to vector<24x128xf32>
    %c0 = arith.constant 0 : index
    %c0_0 = arith.constant 0 : index
    %1 = vector.load %arg7[%c0, %c0_0] : memref<24x128xf32, #tpu.memory_space<vmem>>, vector<24x128xf32>
    tpu.vector_store %arg7[%c0, %c0_0], %0 {strides = array<i32>} : memref<24x128xf32, #tpu.memory_space<vmem>>, vector<24x128xf32>,
    %c0_1 = arith.constant 0 : index
    %c0_2 = arith.constant 0 : index
    %2 = vector.load %arg1[%c0_1, %c0_2] : memref<16x64xf32, #tpu.memory_space<vmem>>, vector<16x64xf32>
    %3 = arith.truncf %2 : vector<16x64xf32> to vector<16x64xbf16>
    %c0_3 = arith.constant 0 : index
    %c0_4 = arith.constant 0 : index
    %4 = vector.load %arg2[%c0_3, %c0_4] : memref<64x1024xbf16, #tpu.memory_space<vmem>>, vector<64x1024xbf16>
    %cst_5 = arith.constant dense<0.000000e+00> : vector<16x1024xf32>
    %5 = tpu.matmul %3, %4, %cst_5 {dimension_numbers = #tpu.dot_dimension_numbers<[1], [0], [0], [1], [0, 0, 1, 1], [], []>} : vector<16x64xbf16>, vector<64x1024xbf16>, vector<16x1024xf32> -> vector<16x1024xf32>
    %c0_6 = arith.constant 0 : index
    %c0_7 = arith.constant 0 : index
    %6 = vector.load %arg5[%c0_6, %c0_7] : memref<8x1024xf32, #tpu.memory_space<vmem>>, vector<1x1024xf32>
    %7 = vector.broadcast %6 : vector<1x1024xf32> to vector<16x1024xf32>
    %8 = arith.addf %5, %7 : vector<16x1024xf32>
    %cst_8 = arith.constant 0.000000e+00 : f32
    %9 = vector.broadcast %cst_8 : f32 to vector<16x1024xf32>
    %10 = arith.maximumf %8, %9 : vector<16x1024xf32>
    %11 = arith.truncf %10 : vector<16x1024xf32> to vector<16x1024xbf16>
    %c0_9 = arith.constant 0 : index
    %c0_10 = arith.constant 0 : index
    %12 = vector.load %arg3[%c0_9, %c0_10] : memref<1024x16xbf16, #tpu.memory_space<vmem>>, vector<1024x16xbf16>
    %cst_11 = arith.constant dense<0.000000e+00> : vector<16x16xf32>
    %13 = tpu.matmul %11, %12, %cst_11 {dimension_numbers = #tpu.dot_dimension_numbers<[1], [0], [0], [1], [0, 0, 1, 1], [], []>} : vector<16x1024xbf16>, vector<1024x16xbf16>, vector<16x16xf32> -> vector<16x16xf32>
    %c1 = arith.constant 1 : index
    %c0_12 = arith.constant 0 : index
    %14 = vector.load %arg5[%c1, %c0_12] : memref<8x1024xf32, #tpu.memory_space<vmem>>, vector<1x1xf32>
    %15 = vector.broadcast %14 : vector<1x1xf32> to vector<16x16xf32>
    %16 = arith.addf %13, %15 : vector<16x16xf32>
    %cst_13 = arith.constant 0.000000e+00 : f32
    %17 = vector.broadcast %cst_13 : f32 to vector<16x16xf32>
    %18 = arith.maximumf %16, %17 : vector<16x16xf32>
    %cst_14 = arith.constant 0.000000e+00 : f32
    %19 = vector.broadcast %cst_14 : f32 to vector<1x16xf32>
    %c0_15 = arith.constant 0 : index
    %c0_16 = arith.constant 0 : index
    %20 = vector.load %arg7[%c0_15, %c0_16] : memref<24x128xf32, #tpu.memory_space<vmem>>, vector<1x16xf32>
    tpu.vector_store %arg7[%c0_15, %c0_16], %19 {strides = array<i32>} : memref<24x128xf32, #tpu.memory_space<vmem>>, vector<1x16xf32>,
    %c1_17 = arith.constant 1 : index
    %c0_18 = arith.constant 0 : index
    %21 = vector.load %arg7[%c1_17, %c0_18] : memref<24x128xf32, #tpu.memory_space<vmem>>, vector<16x16xf32>
    tpu.vector_store %arg7[%c1_17, %c0_18], %18 {strides = array<i32>} : memref<24x128xf32, #tpu.memory_space<vmem>>, vector<16x16xf32>,
    %c0_19 = arith.constant 0 : index
    %c32 = arith.constant 32 : index
    %22 = vector.load %arg7[%c0_19, %c32] : memref<24x128xf32, #tpu.memory_space<vmem>>, vector<16x16xf32>
    tpu.vector_store %arg7[%c0_19, %c32], %18 {strides = array<i32>} : memref<24x128xf32, #tpu.memory_space<vmem>>, vector<16x16xf32>,
    %c0_20 = arith.constant 0 : index
    %c0_21 = arith.constant 0 : index
    %23 = vector.load %arg7[%c0_20, %c0_21] : memref<24x128xf32, #tpu.memory_space<vmem>>, vector<16x64xf32>
    %c0_22 = arith.constant 0 : index
    %c0_23 = arith.constant 0 : index
    %24 = vector.load %arg4[%c0_22, %c0_23] : memref<304x32xbf16, #tpu.memory_space<vmem>>, vector<64x32xbf16>
    %25 = arith.truncf %23 : vector<16x64xf32> to vector<16x64xbf16>
    %cst_24 = arith.constant dense<0.000000e+00> : vector<16x32xf32>
    %26 = tpu.matmul %25, %24, %cst_24 {dimension_numbers = #tpu.dot_dimension_numbers<[1], [0], [0], [1], [0, 0, 1, 1], [], []>} : vector<16x64xbf16>, vector<64x32xbf16>, vector<16x32xf32> -> vector<16x32xf32>
    %c2 = arith.constant 2 : index
    %c0_25 = arith.constant 0 : index
    %27 = vector.load %arg5[%c2, %c0_25] : memref<8x1024xf32, #tpu.memory_space<vmem>>, vector<1x32xf32>
    %28 = vector.broadcast %27 : vector<1x32xf32> to vector<16x32xf32>
    %29 = arith.addf %26, %28 : vector<16x32xf32>
    %cst_26 = arith.constant 0.000000e+00 : f32
    %30 = vector.broadcast %cst_26 : f32 to vector<16x32xf32>
    %31 = arith.maximumf %29, %30 : vector<16x32xf32>
    %c128 = arith.constant 128 : index
    %c0_27 = arith.constant 0 : index
    %32 = vector.load %arg4[%c128, %c0_27] : memref<304x32xbf16, #tpu.memory_space<vmem>>, vector<16x32xbf16>
    %33 = arith.truncf %18 : vector<16x16xf32> to vector<16x16xbf16>
    %cst_28 = arith.constant dense<0.000000e+00> : vector<16x32xf32>
    %34 = tpu.matmul %33, %32, %cst_28 {dimension_numbers = #tpu.dot_dimension_numbers<[1], [0], [0], [1], [0, 0, 1, 1], [], []>} : vector<16x16xbf16>, vector<16x32xbf16>, vector<16x32xf32> -> vector<16x32xf32>
    %c4 = arith.constant 4 : index
    %c0_29 = arith.constant 0 : index
    %35 = vector.load %arg5[%c4, %c0_29] : memref<8x1024xf32, #tpu.memory_space<vmem>>, vector<1x32xf32>
    %36 = vector.broadcast %35 : vector<1x32xf32> to vector<16x32xf32>
    %37 = arith.addf %34, %36 : vector<16x32xf32>
    %cst_30 = arith.constant 0.000000e+00 : f32
    %38 = vector.broadcast %cst_30 : f32 to vector<1x32xf32>
    %c0_31 = arith.constant 0 : index
    %c64 = arith.constant 64 : index
    %39 = vector.load %arg7[%c0_31, %c64] : memref<24x128xf32, #tpu.memory_space<vmem>>, vector<1x32xf32>
    tpu.vector_store %arg7[%c0_31, %c64], %38 {strides = array<i32>} : memref<24x128xf32, #tpu.memory_space<vmem>>, vector<1x32xf32>,
    %c1_32 = arith.constant 1 : index
    %c64_33 = arith.constant 64 : index
    %40 = vector.load %arg7[%c1_32, %c64_33] : memref<24x128xf32, #tpu.memory_space<vmem>>, vector<16x32xf32>
    tpu.vector_store %arg7[%c1_32, %c64_33], %31 {strides = array<i32>} : memref<24x128xf32, #tpu.memory_space<vmem>>, vector<16x32xf32>,
    %c0_34 = arith.constant 0 : index
    %c96 = arith.constant 96 : index
    %41 = vector.load %arg7[%c0_34, %c96] : memref<24x128xf32, #tpu.memory_space<vmem>>, vector<16x32xf32>
    tpu.vector_store %arg7[%c0_34, %c96], %31 {strides = array<i32>} : memref<24x128xf32, #tpu.memory_space<vmem>>, vector<16x32xf32>,
    %c0_35 = arith.constant 0 : index
    %c64_36 = arith.constant 64 : index
    %42 = vector.load %arg7[%c0_35, %c64_36] : memref<24x128xf32, #tpu.memory_space<vmem>>, vector<16x64xf32>
    %c64_37 = arith.constant 64 : index
    %c0_38 = arith.constant 0 : index
    %43 = vector.load %arg4[%c64_37, %c0_38] : memref<304x32xbf16, #tpu.memory_space<vmem>>, vector<64x32xbf16>
    %44 = arith.truncf %42 : vector<16x64xf32> to vector<16x64xbf16>
    %cst_39 = arith.constant dense<0.000000e+00> : vector<16x32xf32>
    %45 = tpu.matmul %44, %43, %cst_39 {dimension_numbers = #tpu.dot_dimension_numbers<[1], [0], [0], [1], [0, 0, 1, 1], [], []>} : vector<16x64xbf16>, vector<64x32xbf16>, vector<16x32xf32> -> vector<16x32xf32>
    %c3 = arith.constant 3 : index
    %c0_40 = arith.constant 0 : index
    %46 = vector.load %arg5[%c3, %c0_40] : memref<8x1024xf32, #tpu.memory_space<vmem>>, vector<1x32xf32>
    %47 = vector.broadcast %46 : vector<1x32xf32> to vector<16x32xf32>
    %48 = arith.addf %45, %47 : vector<16x32xf32>
    %cst_41 = arith.constant 0.000000e+00 : f32
    %49 = vector.broadcast %cst_41 : f32 to vector<16x32xf32>
    %50 = arith.maximumf %48, %49 : vector<16x32xf32>
    %51 = arith.addf %50, %37 : vector<16x32xf32>
    %cst_42 = arith.constant 0.000000e+00 : f32
    %52 = vector.broadcast %cst_42 : f32 to vector<16x32xf32>
    %53 = arith.maximumf %51, %52 : vector<16x32xf32>
    %cst_43 = arith.constant 0.000000e+00 : f32
    %54 = vector.broadcast %cst_43 : f32 to vector<2x32xf32>
    %c0_44 = arith.constant 0 : index
    %c0_45 = arith.constant 0 : index
    %55 = vector.load %arg7[%c0_44, %c0_45] : memref<24x128xf32, #tpu.memory_space<vmem>>, vector<2x32xf32>
    tpu.vector_store %arg7[%c0_44, %c0_45], %54 {strides = array<i32>} : memref<24x128xf32, #tpu.memory_space<vmem>>, vector<2x32xf32>,
    %c2_46 = arith.constant 2 : index
    %c0_47 = arith.constant 0 : index
    %56 = vector.load %arg7[%c2_46, %c0_47] : memref<24x128xf32, #tpu.memory_space<vmem>>, vector<16x32xf32>
    tpu.vector_store %arg7[%c2_46, %c0_47], %53 {strides = array<i32>} : memref<24x128xf32, #tpu.memory_space<vmem>>, vector<16x32xf32>,
    %c0_48 = arith.constant 0 : index
    %c32_49 = arith.constant 32 : index
    %57 = vector.load %arg7[%c0_48, %c32_49] : memref<24x128xf32, #tpu.memory_space<vmem>>, vector<16x32xf32>
    tpu.vector_store %arg7[%c0_48, %c32_49], %53 {strides = array<i32>} : memref<24x128xf32, #tpu.memory_space<vmem>>, vector<16x32xf32>,
    %c0_50 = arith.constant 0 : index
    %c0_51 = arith.constant 0 : index
    %58 = vector.load %arg7[%c0_50, %c0_51] : memref<24x128xf32, #tpu.memory_space<vmem>>, vector<16x64xf32>
    %c144 = arith.constant 144 : index
    %c0_52 = arith.constant 0 : index
    %59 = vector.load %arg4[%c144, %c0_52] : memref<304x32xbf16, #tpu.memory_space<vmem>>, vector<64x32xbf16>
    %60 = arith.truncf %58 : vector<16x64xf32> to vector<16x64xbf16>
    %cst_53 = arith.constant dense<0.000000e+00> : vector<16x32xf32>
    %61 = tpu.matmul %60, %59, %cst_53 {dimension_numbers = #tpu.dot_dimension_numbers<[1], [0], [0], [1], [0, 0, 1, 1], [], []>} : vector<16x64xbf16>, vector<64x32xbf16>, vector<16x32xf32> -> vector<16x32xf32>
    %c5 = arith.constant 5 : index
    %c0_54 = arith.constant 0 : index
    %62 = vector.load %arg5[%c5, %c0_54] : memref<8x1024xf32, #tpu.memory_space<vmem>>, vector<1x32xf32>
    %63 = vector.broadcast %62 : vector<1x32xf32> to vector<16x32xf32>
    %64 = arith.addf %61, %63 : vector<16x32xf32>
    %cst_55 = arith.constant 0.000000e+00 : f32
    %65 = vector.broadcast %cst_55 : f32 to vector<16x32xf32>
    %66 = arith.maximumf %64, %65 : vector<16x32xf32>
    %cst_56 = arith.constant 0.000000e+00 : f32
    %67 = vector.broadcast %cst_56 : f32 to vector<2x32xf32>
    %c0_57 = arith.constant 0 : index
    %c64_58 = arith.constant 64 : index
    %68 = vector.load %arg7[%c0_57, %c64_58] : memref<24x128xf32, #tpu.memory_space<vmem>>, vector<2x32xf32>
    tpu.vector_store %arg7[%c0_57, %c64_58], %67 {strides = array<i32>} : memref<24x128xf32, #tpu.memory_space<vmem>>, vector<2x32xf32>,
    %c2_59 = arith.constant 2 : index
    %c64_60 = arith.constant 64 : index
    %69 = vector.load %arg7[%c2_59, %c64_60] : memref<24x128xf32, #tpu.memory_space<vmem>>, vector<16x32xf32>
    tpu.vector_store %arg7[%c2_59, %c64_60], %66 {strides = array<i32>} : memref<24x128xf32, #tpu.memory_space<vmem>>, vector<16x32xf32>,
    %c0_61 = arith.constant 0 : index
    %c96_62 = arith.constant 96 : index
    %70 = vector.load %arg7[%c0_61, %c96_62] : memref<24x128xf32, #tpu.memory_space<vmem>>, vector<16x32xf32>
    tpu.vector_store %arg7[%c0_61, %c96_62], %66 {strides = array<i32>} : memref<24x128xf32, #tpu.memory_space<vmem>>, vector<16x32xf32>,
    %c0_63 = arith.constant 0 : index
    %c64_64 = arith.constant 64 : index
    %71 = vector.load %arg7[%c0_63, %c64_64] : memref<24x128xf32, #tpu.memory_space<vmem>>, vector<16x64xf32>
    %c208 = arith.constant 208 : index
    %c0_65 = arith.constant 0 : index
    %72 = vector.load %arg4[%c208, %c0_65] : memref<304x32xbf16, #tpu.memory_space<vmem>>, vector<64x32xbf16>
    %73 = arith.truncf %71 : vector<16x64xf32> to vector<16x64xbf16>
    %cst_66 = arith.constant dense<0.000000e+00> : vector<16x32xf32>
    %74 = tpu.matmul %73, %72, %cst_66 {dimension_numbers = #tpu.dot_dimension_numbers<[1], [0], [0], [1], [0, 0, 1, 1], [], []>} : vector<16x64xbf16>, vector<64x32xbf16>, vector<16x32xf32> -> vector<16x32xf32>
    %c6 = arith.constant 6 : index
    %c0_67 = arith.constant 0 : index
    %75 = vector.load %arg5[%c6, %c0_67] : memref<8x1024xf32, #tpu.memory_space<vmem>>, vector<1x32xf32>
    %76 = vector.broadcast %75 : vector<1x32xf32> to vector<16x32xf32>
    %77 = arith.addf %74, %76 : vector<16x32xf32>
    %cst_68 = arith.constant 0.000000e+00 : f32
    %78 = vector.broadcast %cst_68 : f32 to vector<16x32xf32>
    %79 = arith.maximumf %77, %78 : vector<16x32xf32>
    %80 = arith.addf %79, %53 : vector<16x32xf32>
    %cst_69 = arith.constant 0.000000e+00 : f32
    %81 = vector.broadcast %cst_69 : f32 to vector<16x32xf32>
    %82 = arith.maximumf %80, %81 : vector<16x32xf32>
    %c272 = arith.constant 272 : index
    %c0_70 = arith.constant 0 : index
    %83 = vector.load %arg4[%c272, %c0_70] : memref<304x32xbf16, #tpu.memory_space<vmem>>, vector<32x8xbf16>
    %84 = vector.extract_strided_slice %82 {offsets = [15, 0], sizes = [1, 32], strides = [1, 1]} : vector<16x32xf32> to vector<1x32xf32>
    %85 = arith.truncf %84 : vector<1x32xf32> to vector<1x32xbf16>
    %cst_71 = arith.constant dense<0.000000e+00> : vector<1x8xf32>
    %86 = tpu.matmul %85, %83, %cst_71 {dimension_numbers = #tpu.dot_dimension_numbers<[1], [0], [0], [1], [0, 0, 1, 1], [], []>} : vector<1x32xbf16>, vector<32x8xbf16>, vector<1x8xf32> -> vector<1x8xf32>
    %c7 = arith.constant 7 : index
    %c0_72 = arith.constant 0 : index
    %87 = vector.load %arg5[%c7, %c0_72] : memref<8x1024xf32, #tpu.memory_space<vmem>>, vector<1x8xf32>
    %88 = arith.addf %86, %87 : vector<1x8xf32>
    %c0_73 = arith.constant 0 : index
    %c0_74 = arith.constant 0 : index
    %89 = vector.load %arg6[%c0_73, %c0_74] : memref<1x8xf32, #tpu.memory_space<vmem>>, vector<1x8xf32>
    tpu.vector_store %arg6[%c0_73, %c0_74], %88 {strides = array<i32>} : memref<1x8xf32, #tpu.memory_space<vmem>>, vector<1x8xf32>,
    return
  }
  func.func @transform_0(%arg0: i32) -> (i32, i32) {
    %c0_i32 = arith.constant 0 : i32
    %c0_i32_0 = arith.constant 0 : i32
    %c0_i32_1 = arith.constant 0 : i32
    return %c0_i32, %c0_i32_0 : i32, i32
  }
  func.func @transform_1(%arg0: i32) -> (i32, i32) {
    %c0_i32 = arith.constant 0 : i32
    %c0_i32_0 = arith.constant 0 : i32
    %c0_i32_1 = arith.constant 0 : i32
    return %c0_i32, %c0_i32_0 : i32, i32
  }
  func.func @transform_2(%arg0: i32) -> (i32, i32) {
    %c0_i32 = arith.constant 0 : i32
    %c0_i32_0 = arith.constant 0 : i32
    %c0_i32_1 = arith.constant 0 : i32
    return %c0_i32, %c0_i32_0 : i32, i32
  }
  func.func @transform_3(%arg0: i32) -> (i32, i32) {
    %c0_i32 = arith.constant 0 : i32
    %c0_i32_0 = arith.constant 0 : i32
    %c0_i32_1 = arith.constant 0 : i32
    return %c0_i32, %c0_i32_0 : i32, i32
  }
  func.func @transform_4(%arg0: i32) -> (i32, i32) {
    %c0_i32 = arith.constant 0 : i32
    %c0_i32_0 = arith.constant 0 : i32
    %c0_i32_1 = arith.constant 0 : i32
    return %c0_i32, %c0_i32_0 : i32, i32
  }
  func.func @transform_5(%arg0: i32) -> (i32, i32) {
    %c0_i32 = arith.constant 0 : i32
    %c0_i32_0 = arith.constant 0 : i32
    %c0_i32_1 = arith.constant 0 : i32
    return %c0_i32, %c0_i32_0 : i32, i32
  }
}

</mosaic_0001>

<bundles_post_ra>
// kernel: tpu_custom_call.1
= control target key start
LH: loop header
LB: loop body
LE: loop exit
PB: predicated region body
PF: predicated region fallthrough
CT: control target
= control target key end

     0   :  { %v2110_v8 = vmov 0   ;;  %vm264_vm0 = vcmask 523264   ;;  %s2633_s0 = inlined_call_operand.vmem [shape: f32[16,64], index: 0, kind: input, shape index: {}]   ;;  %s2634_s1 = inlined_call_operand.vmem [shape: bf16[64,1024], index: 1, kind: input, shape index: {}]   ;;  %s2635_s2 = inlined_call_operand.vmem [shape: bf16[1024,16], index: 2, kind: input, shape index: {}]   ;;  %s2636_s3 = inlined_call_operand.vmem [shape: bf16[304,32], index: 3, kind: input, shape index: {}]   ;;  %s2637_s4 = inlined_call_operand.vmem [shape: f32[8,1024], index: 4, kind: input, shape index: {}]   ;;  %s2638_s5 = inlined_call_operand.hbm [shape: f32[1,8], index: 5, kind: output, shape index: {}]  }
   0x1   :  { %v28_v0 = vld [vmem:[%s2634_s1] sm:$0xff]  ;;  %v29_v2 = vld [vmem:[%s2634_s1 + $0x8] sm:$0xff]  ;;  %300 = vmatprep.mubr.bf16.mxu0 %v2110_v8  ;;  %343 = vmatprep.mubr.bf16.mxu1 %v2110_v8  ;;  %v30_v33 = vld [vmem:[%s2634_s1 + $0x10] sm:$0xff] }
   0x2   :  { %v32_v1 = vld [vmem:[%s2634_s1 + $0x20] sm:$0xff]  ;;  %v33_v4 = vld [vmem:[%s2634_s1 + $0x28] sm:$0xff]  ;;  %2002 = vset.pattern.permute.xlu0 %v2110_v8  ;;  %v34_v34 = vld [vmem:[%s2634_s1 + $0x30] sm:$0xff] }
   0x3   :  { %v1696_v3 = vcombine.high %v28_v0, %v32_v1  ;;  %v1695_v5 = vcombine.low %v28_v0, %v32_v1  ;;  %v36_v6 = vld [vmem:[%s2634_s1 + $0x40] sm:$0xff]  ;;  %v1698_v9 = vcombine.high %v29_v2, %v33_v4  ;;  %v1697_v10 = vcombine.low %v29_v2, %v33_v4  ;;  %v37_v12 = vld [vmem:[%s2634_s1 + $0x48] sm:$0xff]  ;;  %v31_v35 = vld [vmem:[%s2634_s1 + $0x18] sm:$0xff] }
   0x4   :  { %v40_v7 = vld [vmem:[%s2634_s1 + $0x60] sm:$0xff]  ;;  %v41_v13 = vld [vmem:[%s2634_s1 + $0x68] sm:$0xff]  ;;  %v35_v36 = vld [vmem:[%s2634_s1 + $0x38] sm:$0xff]  ;;  %v1700_v40 = vcombine.high %v30_v33, %v34_v34  ;;  %v1699_v46 = vcombine.low %v30_v33, %v34_v34 }
   0x5   :  { %v1704_v11 = vcombine.high %v36_v6, %v40_v7  ;;  %v44_v14 = vld [vmem:[%s2634_s1 + $0x80] sm:$0xff]  ;;  %268 = vmatprep.subr.bf16.mxu0 %v1696_v3  ;;  %v1706_v15 = vcombine.high %v37_v12, %v41_v13  ;;  %v45_v17 = vld [vmem:[%s2634_s1 + $0x88] sm:$0xff]  ;;  %311 = vmatprep.subr.bf16.mxu1 %v1698_v9  ;;  %v1703_v19 = vcombine.low %v36_v6, %v40_v7  ;;  %v38_v38 = vld [vmem:[%s2634_s1 + $0x50] sm:$0xff] }
   0x6   :  { %v48_v16 = vld [vmem:[%s2634_s1 + $0xa0] sm:$0xff]  ;;  %v49_v18 = vld [vmem:[%s2634_s1 + $0xa8] sm:$0xff]  ;;  %269 = vmatpush1.bf16.msra.mxu0 %v1695_v5  ;;  %312 = vmatpush1.bf16.msra.mxu1 %v1697_v10  ;;  %v1705_v20 = vcombine.low %v37_v12, %v41_v13  ;;  %v42_v41 = vld [vmem:[%s2634_s1 + $0x70] sm:$0xff]  ;;  %v1702_v42 = vcombine.high %v31_v35, %v35_v36  ;;  %v1701_v48 = vcombine.low %v31_v35, %v35_v36 }
   0x7   :  { %270 = vmatprep.subr.bf16.mxu0 %v1704_v11  ;;  %v1712_v21 = vcombine.high %v44_v14, %v48_v16  ;;  %313 = vmatprep.subr.bf16.mxu1 %v1706_v15  ;;  %v1714_v22 = vcombine.high %v45_v17, %v49_v18  ;;  %v52_v23 = vld [vmem:[%s2634_s1 + $0xc0] sm:$0xff]  ;;  %v53_v25 = vld [vmem:[%s2634_s1 + $0xc8] sm:$0xff]  ;;  %v1711_v27 = vcombine.low %v44_v14, %v48_v16  ;;  %v39_v43 = vld [vmem:[%s2634_s1 + $0x58] sm:$0xff] }
   0x8   :  { %v56_v24 = vld [vmem:[%s2634_s1 + $0xe0] sm:$0xff]  ;;  %v57_v26 = vld [vmem:[%s2634_s1 + $0xe8] sm:$0xff]  ;;  %v1713_v28 = vcombine.low %v45_v17, %v49_v18  ;;  %v43_v45 = vld [vmem:[%s2634_s1 + $0x78] sm:$0xff]  ;;  %v1708_v49 = vcombine.high %v38_v38, %v42_v41  ;;  %v1707_v54 = vcombine.low %v38_v38, %v42_v41 }
   0x9   :  { %v1720_v29 = vcombine.high %v52_v23, %v56_v24  ;;  %v1722_v30 = vcombine.high %v53_v25, %v57_v26  ;;  %v25_v31 = vld [vmem:[%s2633_s0] sm:$0xff]  ;;  %v26_v32 = vld [vmem:[%s2633_s0 + $0x8] sm:$0xff]  ;;  %v1719_v37 = vcombine.low %v52_v23, %v56_v24  ;;  %v1721_v39 = vcombine.low %v53_v25, %v57_v26  ;;  %v46_v47 = vld [vmem:[%s2634_s1 + $0x90] sm:$0xff] }
   0xa   :  { %271 = vmatpush1.bf16.msra.mxu0 %v1703_v19  ;;  %314 = vmatpush1.bf16.msra.mxu1 %v1705_v20  ;;  %v27_v44 = vpack.c.bf16 %v26_v32, %v25_v31  ;;  %v50_v50 = vld [vmem:[%s2634_s1 + $0xb0] sm:$0xff]  ;;  %v1710_v51 = vcombine.high %v39_v43, %v43_v45  ;;  %v47_v52 = vld [vmem:[%s2634_s1 + $0x98] sm:$0xff]  ;;  %v1709_v56 = vcombine.low %v39_v43, %v43_v45  ;;  %v2003_v4 = vld [vmem:[%s2635_s2 + $0x40] sm:$0xff]  }
   0xb   :  { %272 = vmatprep.subr.bf16.mxu0 %v1712_v21  ;;  %315 = vmatprep.subr.bf16.mxu1 %v1714_v22  ;;  %v51_v53 = vld [vmem:[%s2634_s1 + $0xb8] sm:$0xff]  ;;  %v54_v55 = vld [vmem:[%s2634_s1 + $0xd0] sm:$0xff]  ;;  %v1716_v57 = vcombine.high %v46_v47, %v50_v50  ;;  %v1715_v62 = vcombine.low %v46_v47, %v50_v50  ;;  %v2004_v5 = vld [vmem:[%s2635_s2 + $0xc0] sm:$0xff]  }
   0xc   :  { %v58_v58 = vld [vmem:[%s2634_s1 + $0xf0] sm:$0xff]  ;;  %v1718_v59 = vcombine.high %v47_v52, %v51_v53  ;;  %v55_v60 = vld [vmem:[%s2634_s1 + $0xd8] sm:$0xff]  ;;  %v1717_v63 = vcombine.low %v47_v52, %v51_v53  ;;  %v2005_v6 = vld [vmem:[%s2635_s2] sm:$0xff]  }
   0xd   :  { %v59_v61 = vld [vmem:[%s2634_s1 + $0xf8] sm:$0xff]  ;;  %v1724_v0 = vcombine.high %v54_v55, %v58_v58  ;;  %v1723_v2 = vcombine.low %v54_v55, %v58_v58  ;;  %v2006_v7 = vld [vmem:[%s2635_s2 + $0x80] sm:$0xff]   ;;  %v2008_v9 = vld [vmem:[%s2635_s2 + $0xc8] sm:$0xff]  }
   0xe   :  { %273 = vmatpush1.bf16.msra.mxu0 %v1711_v27  ;;  %316 = vmatpush1.bf16.msra.mxu1 %v1713_v28  ;;  %v1726_v1 = vcombine.high %v55_v60, %v59_v61  ;;  %v1725_v3 = vcombine.low %v55_v60, %v59_v61  ;;  %v2009_v10 = vld [vmem:[%s2635_s2 + $0x8] sm:$0xff]   ;;  %v2011_v12 = vld [vmem:[%s2635_s2 + $0x50] sm:$0xff]   ;;  %v2015_v16 = vld [vmem:[%s2635_s2 + $0x58] sm:$0xff]  }
   0xf   :  { %274 = vmatprep.subr.bf16.mxu0 %v1720_v29  ;;  %317 = vmatprep.subr.bf16.mxu1 %v1722_v30  ;;  %v2010_v11 = vld [vmem:[%s2635_s2 + $0x88] sm:$0xff]   ;;  %v2012_v13 = vld [vmem:[%s2635_s2 + $0xd0] sm:$0xff]   ;;  %v2016_v17 = vld [vmem:[%s2635_s2 + $0xd8] sm:$0xff]  }
  0x10   :  { %v2013_v14 = vld [vmem:[%s2635_s2 + $0x10] sm:$0xff]   ;;  %v2017_v18 = vld [vmem:[%s2635_s2 + $0x18] sm:$0xff]   ;;  %v2019_v20 = vld [vmem:[%s2635_s2 + $0x60] sm:$0xff]  }
  0x11   :  { %v2014_v15 = vld [vmem:[%s2635_s2 + $0x90] sm:$0xff]   ;;  %v2018_v19 = vld [vmem:[%s2635_s2 + $0x98] sm:$0xff]   ;;  %v2020_v21 = vld [vmem:[%s2635_s2 + $0xe0] sm:$0xff]  }
  0x12   :  { %275 = vmatpush1.bf16.msra.mxu0 %v1719_v37  ;;  %318 = vmatpush1.bf16.msra.mxu1 %v1721_v39  ;;  %v2021_v22 = vld [vmem:[%s2635_s2 + $0x20] sm:$0xff]   ;;  %v2023_v24 = vld [vmem:[%s2635_s2 + $0x68] sm:$0xff]  }
  0x13   :  { %354 = vmatprep.subr.bf16.mxu0 %v1700_v40  ;;  %397 = vmatprep.subr.bf16.mxu1 %v1702_v42  ;;  %v2022_v23 = vld [vmem:[%s2635_s2 + $0xa0] sm:$0xff]   ;;  %v2024_v25 = vld [vmem:[%s2635_s2 + $0xe8] sm:$0xff]  }
  0x14   :  { %v2025_v26 = vld [vmem:[%s2635_s2 + $0x28] sm:$0xff]  }
  0x15   :  { %1727 = vmatmul.mubr.msk.bf16.vlgmr.msra.gmra.mrb[0].mxu0 %vm264_vm0, %v27_v44  ;;  %1728 = vmatmul.mubr.msk.bf16.vlgmr.msra.gmra.mrb[0].mxu1 %vm264_vm0, %v27_v44  ;;  %v2026_v27 = vld [vmem:[%s2635_s2 + $0xa8] sm:$0xff]  }
  0x16   :  { %355 = vmatpush1.bf16.msra.mxu0 %v1699_v46  ;;  %398 = vmatpush1.bf16.msra.mxu1 %v1701_v48 }
  0x17   :  { %356 = vmatprep.subr.bf16.mxu0 %v1708_v49  ;;  %399 = vmatprep.subr.bf16.mxu1 %v1710_v51 }
  0x18   :  { %386 = vmatprep.mubr.bf16.mxu0 %v2110_v8  ;;  %429 = vmatprep.mubr.bf16.mxu1 %v2110_v8  ;;  %v2007_v8 = vld [vmem:[%s2635_s2 + $0x48] sm:$0xff]  }
  0x1a   :  { %357 = vmatpush1.bf16.msra.mxu0 %v1707_v54  ;;  %400 = vmatpush1.bf16.msra.mxu1 %v1709_v56 }
  0x1b   :  { %358 = vmatprep.subr.bf16.mxu0 %v1716_v57  ;;  %401 = vmatprep.subr.bf16.mxu1 %v1718_v59 }
  0x1e   :  { %359 = vmatpush1.bf16.msra.mxu0 %v1715_v62  ;;  %402 = vmatpush1.bf16.msra.mxu1 %v1717_v63 }
  0x1f   :  { %360 = vmatprep.subr.bf16.mxu0 %v1724_v0  ;;  %403 = vmatprep.subr.bf16.mxu1 %v1726_v1 }
  0x22   :  { %361 = vmatpush1.bf16.msra.mxu0 %v1723_v2  ;;  %404 = vmatpush1.bf16.msra.mxu1 %v1725_v3 }
  0x23   :  { %1820 = vmatprep.subr.bf16.mxu0 %v2003_v4  ;;  %1842 = vmatprep.subr.bf16.mxu1 %v2004_v5 }
  0x25   :  { %1729 = vmatmul.mubr.msk.bf16.vlgmr.msra.gmra.mrb[4].mxu0 %vm264_vm0, %v27_v44  ;;  %1730 = vmatmul.mubr.msk.bf16.vlgmr.msra.gmra.mrb[4].mxu1 %vm264_vm0, %v27_v44 }
  0x26   :  { %1821 = vmatpush3.bf16.msra.mxu0 %v2005_v6  ;;  %1843 = vmatpush3.bf16.msra.mxu1 %v2006_v7 }
  0x27   :  { %1822 = vmatprep.subr.bf16.mxu0 %v2007_v8  ;;  %1844 = vmatprep.subr.bf16.mxu1 %v2008_v9 }
  0x2a   :  { %1823 = vmatpush3.bf16.msra.mxu0 %v2009_v10  ;;  %1845 = vmatpush3.bf16.msra.mxu1 %v2010_v11 }
  0x2b   :  { %1824 = vmatprep.subr.bf16.mxu0 %v2011_v12  ;;  %1846 = vmatprep.subr.bf16.mxu1 %v2012_v13 }
  0x2e   :  { %1825 = vmatpush3.bf16.msra.mxu0 %v2013_v14  ;;  %1847 = vmatpush3.bf16.msra.mxu1 %v2014_v15 }
  0x2f   :  { %1826 = vmatprep.subr.bf16.mxu0 %v2015_v16  ;;  %1848 = vmatprep.subr.bf16.mxu1 %v2016_v17 }
  0x32   :  { %1827 = vmatpush3.bf16.msra.mxu0 %v2017_v18  ;;  %1849 = vmatpush3.bf16.msra.mxu1 %v2018_v19 }
  0x33   :  { %1828 = vmatprep.subr.bf16.mxu0 %v2019_v20  ;;  %1850 = vmatprep.subr.bf16.mxu1 %v2020_v21 }
  0x36   :  { %1829 = vmatpush3.bf16.msra.mxu0 %v2021_v22  ;;  %1851 = vmatpush3.bf16.msra.mxu1 %v2022_v23 }
  0x37   :  { %1830 = vmatprep.subr.bf16.mxu0 %v2023_v24  ;;  %1852 = vmatprep.subr.bf16.mxu1 %v2024_v25 }
  0x3a   :  { %1831 = vmatpush3.bf16.msra.mxu0 %v2025_v26  ;;  %1853 = vmatpush3.bf16.msra.mxu1 %v2026_v27 }
  0x3b   :  { %10 = vsyncpa [#allocation4], 0  ;;  %v2027_v28 = vld [vmem:[%s2635_s2 + $0x70] sm:$0xff]   ;;  %v2031_v32 = vld [vmem:[%s2635_s2 + $0x78] sm:$0xff]   ;;  %v64_v39 = vlaneseq  ;;  %vm2112_vm1 = vmmov 0   ;;  %vm1148_vm2 = vcmask 122880  }
  0x3c   :  { %v2028_v29 = vld [vmem:[%s2635_s2 + $0xf0] sm:$0xff]   ;;  %1832 = vmatprep.subr.bf16.mxu0 %v2027_v28  ;;  %v2032_v33 = vld [vmem:[%s2635_s2 + $0xf8] sm:$0xff]   ;;  %v2035_v36 = vld [vmem:[%s2635_s2 + $0x140] sm:$0xff]   ;;  %vm1150_vm3 = vcmask 130048   ;;  %s2113_s16 = smov 32   ;;  %vm1161_vm4 = vcmask 392448  }
  0x3d   :  { %v2029_v30 = vld [vmem:[%s2635_s2 + $0x30] sm:$0xff]   ;;  %1854 = vmatprep.subr.bf16.mxu1 %v2028_v29  ;;  %v2033_v34 = vld [vmem:[%s2635_s2 + $0x38] sm:$0xff]   ;;  %v2036_v37 = vld [vmem:[%s2635_s2 + $0x1c0] sm:$0xff]   ;;  %v2363_v40 = vshrl.u32 %v64_v39, 7  ;;  %vm1300_vm5 = vcmask 778752   ;;  %s2114_s19 = smov 64  }
  0x3e   :  { %v2030_v31 = vld [vmem:[%s2635_s2 + $0xb0] sm:$0xff]   ;;  %1833 = vmatpush3.bf16.msra.mxu0 %v2029_v30  ;;  %v2034_v35 = vld [vmem:[%s2635_s2 + $0xb8] sm:$0xff]   ;;  %v592_v38 = vld [vmem:[%s2637_s4 + $0x1] ss:$0 sm:$0xff]  ;;  %s2115_s22 = smov 96   ;;  %vm1310_vm6 = vcmask 785920  }
  0x3f   :  { %1855 = vmatpush3.bf16.msra.mxu1 %v2030_v31  ;;  %1834 = vmatprep.subr.bf16.mxu0 %v2031_v32  ;;  %v60_v41 = vld [vmem:[%s2637_s4] ss:$8 sm:$0xf]  ;;  %v66_v44 = vsub.s32 0, %v2363_v40  ;;  %v74_v45 = vsub.s32 2, %v2363_v40  ;;  %v70_v46 = vsub.s32 1, %v2363_v40 }
  0x40   :  { %1856 = vmatprep.subr.bf16.mxu1 %v2032_v33  ;;  %595 = vperm.xlu0 %2002, %v592_v38   ;;  %v61_v42 = vld [vmem:[%s2637_s4] ss:$8 sm:$0xf0]  ;;  %v78_v47 = vsub.s32 3, %v2363_v40  ;;  %v82_v19 = vsub.s32 4, %v2363_v40  ;;  %v86_v21 = vsub.s32 5, %v2363_v40 }
  0x41   :  { %v62_v43 = vor.u32 %v61_v42, %v60_v41  ;;  %v2037_v15 = vld [vmem:[%s2635_s2 + $0x100] sm:$0xff]   ;;  %v2039_v18 = vld [vmem:[%s2635_s2 + $0x148] sm:$0xff]   ;;  %v90_v22 = vsub.s32 6, %v2363_v40  ;;  %v94_v23 = vsub.s32 7, %v2363_v40  ;;  %v2043_v26 = vld [vmem:[%s2635_s2 + $0x150] sm:$0xff]   ;;  %vm1319_vm7 = vcmask 1048320  }
  0x42   :  { %1835 = vmatpush3.bf16.msra.mxu0 %v2033_v34  ;;  %v2038_v17 = vld [vmem:[%s2635_s2 + $0x180] sm:$0xff]   ;;  %v2040_v20 = vld [vmem:[%s2635_s2 + $0x1c8] sm:$0xff]   ;;  %v2044_v28 = vld [vmem:[%s2635_s2 + $0x1d0] sm:$0xff]   ;;  %vm1411_vm8 = vcmask 254976   ;;  %vm1413_vm9 = vcmask 261120   ;;  %vm1424_vm10 = vcmask 523520  }
  0x43   :  { %1857 = vmatpush3.bf16.msra.mxu1 %v2034_v35  ;;  %1864 = vmatprep.subr.bf16.mxu0 %v2035_v36  ;;  %v67_v48 = vrot.slane %v62_v43, %v66_v44  ;;  %v75_v49 = vrot.slane %v62_v43, %v74_v45  ;;  %v71_v50 = vrot.slane %v62_v43, %v70_v46  ;;  %v2041_v24 = vld [vmem:[%s2635_s2 + $0x108] sm:$0xff]   ;;  %v2045_v32 = vld [vmem:[%s2635_s2 + $0x110] sm:$0xff]   ;;  %v2047_v35 = vld [vmem:[%s2635_s2 + $0x158] sm:$0xff]   ;;  %vm1509_vm11 = vcmask 779776   ;;  %s2116_s30 = smov [#allocation3]  }
  0x44   :  { %1886 = vmatprep.subr.bf16.mxu1 %v2036_v37  ;;  %v79_v51 = vrot.slane %v62_v43, %v78_v47  ;;  %v2042_v25 = vld [vmem:[%s2635_s2 + $0x188] sm:$0xff]   ;;  %v83_v27 = vrot.slane %v62_v43, %v82_v19  ;;  %v87_v29 = vrot.slane %v62_v43, %v86_v21  ;;  %v91_v30 = vrot.slane %v62_v43, %v90_v22  ;;  %v2046_v34 = vld [vmem:[%s2635_s2 + $0x190] sm:$0xff]   ;;  %v2048_v39 = vld [vmem:[%s2635_s2 + $0x1d8] sm:$0xff]   ;;  %s1687_s6 = sshll.u32 %s2116_s30, 4  ;;  %s1688_s6 = int_to_ptr.vmem [resolvable:$true] %s1687_s6 }
  0x45   :  { %v95_v31 = vrot.slane %v62_v43, %v94_v23  ;;  %v2067_v19 = vld [vmem:[%s2636_s3 + $0x40] sm:$0xff]   ;;  %vm1679_vm12 = vcmask 57344   ;;  %s2086_s7 = scalar_lea.vmem %s1688_s6, 16  ;;  %s2090_s8 = scalar_lea.vmem %s1688_s6, 32 }
  0x46   :  { %p2087_p0 = scmp.ne.s32.totalorder %s1688_s6, %s2086_s7  ;;  %p2091_p1 = scmp.lt.s32.totalorder %s1688_s6, %s1688_s6 }
  0x47   :  { %p2092_p2 = scmp.lt.s32.totalorder %s2090_s8, %s2086_s7 }
  0x49   :  { %p2093_p3 = por %p2092_p2, %p2091_p1 }
  0x4b   :  { %p2094_p4 = pnand %p2093_p3, %p2087_p0 }
  0xbf   :  { %v596_v22 = vpop.permute.xlu0 %595 }
  0xe8   :  { %v302_v52 = vpop.f32.mrb[0].mxu0  ;;  %v345_v54 = vpop.f32.mrb[0].mxu1 }
  0xe9   :  { %v303_v53 = vadd.f32 %v302_v52, %v67_v48  ;;  %v304_v55 = vpop.f32.mrb[1].mxu0  ;;  %v346_v56 = vadd.f32 %v345_v54, %v75_v49  ;;  %v347_v58 = vpop.f32.mrb[1].mxu1 }
  0xea   :  { %v305_v57 = vadd.f32 %v304_v55, %v71_v50  ;;  %v306_v59 = vpop.f32.mrb[2].mxu0  ;;  %v348_v60 = vadd.f32 %v347_v58, %v79_v51  ;;  %v349_v62 = vpop.f32.mrb[2].mxu1  ;;  %v2050_v55 = vld [vmem:[%s2635_s2 + $0x198] sm:$0xff]  }
  0xeb   :  { %v307_v61 = vadd.f32 %v306_v59, %v67_v48  ;;  %v308_v63 = vpop.f32.mrb[3].mxu0  ;;  %v442_v0 = vmax.f32 %v346_v56, 0.0  ;;  %v350_v1 = vadd.f32 %v349_v62, %v75_v49  ;;  %v351_v3 = vpop.f32.mrb[3].mxu1  ;;  %v440_v4 = vmax.f32 %v303_v53, 0.0  ;;  %v2049_v49 = vld [vmem:[%s2635_s2 + $0x118] sm:$0xff]   ;;  %v2051_v56 = vld [vmem:[%s2635_s2 + $0x160] sm:$0xff]  }
  0xec   :  { %v309_v2 = vadd.f32 %v308_v63, %v71_v50  ;;  %v443_v5 = vmax.f32 %v348_v60, 0.0  ;;  %v352_v7 = vadd.f32 %v351_v3, %v79_v51  ;;  %v441_v8 = vmax.f32 %v305_v57, 0.0  ;;  %v2052_v60 = vld [vmem:[%s2635_s2 + $0x1e0] sm:$0xff]  }
  0xed   :  { %v448_v6 = vmax.f32 %v307_v61, 0.0  ;;  %v450_v9 = vmax.f32 %v350_v1, 0.0  ;;  %v2053_v1 = vld [vmem:[%s2635_s2 + $0x120] sm:$0xff]  }
  0xee   :  { %v449_v10 = vmax.f32 %v309_v2, 0.0  ;;  %v451_v12 = vmax.f32 %v352_v7, 0.0  ;;  %v2056_v7 = vld [vmem:[%s2635_s2 + $0x1e8] sm:$0xff]  }
  0xef   :  { %v456_v11 = vpack.c.bf16 %v448_v6, %v440_v4  ;;  %v458_v13 = vpack.c.bf16 %v450_v9, %v442_v0  ;;  %v2054_v4 = vld [vmem:[%s2635_s2 + $0x1a0] sm:$0xff]   ;;  %v2058_v9 = vld [vmem:[%s2635_s2 + $0x1a8] sm:$0xff]  }
  0xf0   :  { %v457_v14 = vpack.c.bf16 %v449_v10, %v441_v8  ;;  %v459_v16 = vpack.c.bf16 %v451_v12, %v443_v5  ;;  %v2055_v5 = vld [vmem:[%s2635_s2 + $0x168] sm:$0xff]   ;;  %v2059_v10 = vld [vmem:[%s2635_s2 + $0x170] sm:$0xff]  }
  0xf1   :  { %v2057_v8 = vld [vmem:[%s2635_s2 + $0x128] sm:$0xff]   ;;  %v2061_v12 = vld [vmem:[%s2635_s2 + $0x130] sm:$0xff]  }
  0xf2   :  { %1014 = vmatprep.mubr.bf16.mxu0 %v457_v14  ;;  %1055 = vmatprep.mubr.bf16.mxu1 %v459_v16  ;;  %v2063_v14 = vld [vmem:[%s2635_s2 + $0x178] sm:$0xff]  }
  0xf3   :  { %1015 = vmatmul.mubr.bf16.vlgmr.msra.gmra.mrb[8].mxu0 %v456_v11  ;;  %1056 = vmatmul.mubr.bf16.vlgmr.msra.gmra.mrb[8].mxu1 %v458_v13  ;;  %v2060_v11 = vld [vmem:[%s2635_s2 + $0x1f0] sm:$0xff]   ;;  %v2065_v16 = vld [vmem:[%s2635_s2 + $0x138] sm:$0xff]  }
  0xf4   :  { %1865 = vmatpush3.bf16.msra.mxu0 %v2037_v15  ;;  %1887 = vmatpush3.bf16.msra.mxu1 %v2038_v17  ;;  %v2062_v13 = vld [vmem:[%s2635_s2 + $0x1b0] sm:$0xff]   ;;  %v2064_v15 = vld [vmem:[%s2635_s2 + $0x1f8] sm:$0xff]  }
  0xf5   :  { %1866 = vmatprep.subr.bf16.mxu0 %v2039_v18  ;;  %1888 = vmatprep.subr.bf16.mxu1 %v2040_v20  ;;  %v2066_v17 = vld [vmem:[%s2635_s2 + $0x1b8] sm:$0xff]   ;;  %v2111_v18 = vmov 0.0   ;;  %v2068_v20 = vld [vmem:[%s2636_s3] sm:$0xff]  }
  0xf6   :  { %22 = vst [vmem:[#allocation2] sm:$0xff] %v2111_v18  ;;  %23 = vst [vmem:[#allocation2 + $0x8] sm:$0xff] %v2111_v18 }
  0xf7   :  { %1149 = vst.msk [vmem:[#allocation2] sm:$0x1] %vm1148_vm2, %v2111_v18 }
  0xf8   :  { %1867 = vmatpush3.bf16.msra.mxu0 %v2041_v24  ;;  %v388_v33 = vpop.f32.mrb[4].mxu0  ;;  %1889 = vmatpush3.bf16.msra.mxu1 %v2042_v25  ;;  %v431_v38 = vpop.f32.mrb[4].mxu1 }
  0xf9   :  { %1868 = vmatprep.subr.bf16.mxu0 %v2043_v26  ;;  %v389_v36 = vadd.f32 %v388_v33, %v83_v27  ;;  %v390_v37 = vpop.f32.mrb[5].mxu0  ;;  %1890 = vmatprep.subr.bf16.mxu1 %v2044_v28  ;;  %v432_v42 = vadd.f32 %v431_v38, %v91_v30  ;;  %v433_v43 = vpop.f32.mrb[5].mxu1  ;;  %v2069_v38 = vld [vmem:[%s2636_s3 + $0x8] sm:$0xff]  }
  0xfa   :  { %v391_v40 = vadd.f32 %v390_v37, %v87_v29  ;;  %v392_v41 = vpop.f32.mrb[6].mxu0  ;;  %v434_v47 = vadd.f32 %v433_v43, %v95_v31  ;;  %v435_v48 = vpop.f32.mrb[6].mxu1 }
  0xfb   :  { %v444_v44 = vmax.f32 %v389_v36, 0.0  ;;  %v393_v45 = vadd.f32 %v392_v41, %v83_v27  ;;  %v394_v46 = vpop.f32.mrb[7].mxu0  ;;  %v446_v51 = vmax.f32 %v432_v42, 0.0  ;;  %v436_v53 = vadd.f32 %v435_v48, %v91_v30  ;;  %v437_v54 = vpop.f32.mrb[7].mxu1  ;;  %v2070_v42 = vld [vmem:[%s2636_s3 + $0x10] sm:$0xff]  }
  0xfc   :  { %1869 = vmatpush3.bf16.msra.mxu0 %v2045_v32  ;;  %v445_v50 = vmax.f32 %v391_v40, 0.0  ;;  %v395_v52 = vadd.f32 %v394_v46, %v87_v29  ;;  %1891 = vmatpush3.bf16.msra.mxu1 %v2046_v34  ;;  %v447_v58 = vmax.f32 %v434_v47, 0.0  ;;  %v438_v59 = vadd.f32 %v437_v54, %v95_v31 }
  0xfd   :  { %1870 = vmatprep.subr.bf16.mxu0 %v2047_v35  ;;  %v452_v57 = vmax.f32 %v393_v45, 0.0  ;;  %1892 = vmatprep.subr.bf16.mxu1 %v2048_v39  ;;  %v454_v62 = vmax.f32 %v436_v53, 0.0  ;;  %v2071_v53 = vld [vmem:[%s2636_s3 + $0x18] sm:$0xff]  }
  0xfe   :  { %v453_v61 = vmax.f32 %v395_v52, 0.0  ;;  %v455_v0 = vmax.f32 %v438_v59, 0.0 }
  0xff   :  { %v460_v63 = vpack.c.bf16 %v452_v57, %v444_v44  ;;  %v462_v3 = vpack.c.bf16 %v454_v62, %v446_v51 }
 0x100   :  { %1871 = vmatpush3.bf16.msra.mxu0 %v2049_v49  ;;  %v461_v2 = vpack.c.bf16 %v453_v61, %v445_v50  ;;  %1893 = vmatpush3.bf16.msra.mxu1 %v2050_v55  ;;  %v463_v6 = vpack.c.bf16 %v455_v0, %v447_v58 }
 0x101   :  { %1872 = vmatprep.subr.bf16.mxu0 %v2051_v56  ;;  %1894 = vmatprep.subr.bf16.mxu1 %v2052_v60 }
 0x102   :  { %1096 = vmatprep.mubr.bf16.mxu0 %v461_v2  ;;  %1137 = vmatprep.mubr.bf16.mxu1 %v463_v6 }
 0x104   :  { %1873 = vmatpush3.bf16.msra.mxu0 %v2053_v1  ;;  %1895 = vmatpush3.bf16.msra.mxu1 %v2054_v4 }
 0x105   :  { %1874 = vmatprep.subr.bf16.mxu0 %v2055_v5  ;;  %1896 = vmatprep.subr.bf16.mxu1 %v2056_v7  ;;  %v1175_v5 = vld [vmem:[%s2637_s4 + $0x2] ss:$0 sm:$0xff] }
 0x108   :  { %1875 = vmatpush3.bf16.msra.mxu0 %v2057_v8  ;;  %1897 = vmatpush3.bf16.msra.mxu1 %v2058_v9 }
 0x109   :  { %1876 = vmatprep.subr.bf16.mxu0 %v2059_v10  ;;  %1898 = vmatprep.subr.bf16.mxu1 %v2060_v11 }
 0x10c   :  { %1877 = vmatpush3.bf16.msra.mxu0 %v2061_v12  ;;  %1899 = vmatpush3.bf16.msra.mxu1 %v2062_v13 }
 0x10d   :  { %1878 = vmatprep.subr.bf16.mxu0 %v2063_v14  ;;  %1900 = vmatprep.subr.bf16.mxu1 %v2064_v15  ;;  %v2072_v14 = vld [vmem:[%s2636_s3 + $0x20] sm:$0xff]   ;;  %v2073_v15 = vld [vmem:[%s2636_s3 + $0x28] sm:$0xff]  }
 0x110   :  { %1879 = vmatpush3.bf16.msra.mxu0 %v2065_v16  ;;  %1901 = vmatpush3.bf16.msra.mxu1 %v2066_v17  ;;  %v2074_v16 = vld [vmem:[%s2636_s3 + $0x30] sm:$0xff]   ;;  %v2075_v17 = vld [vmem:[%s2636_s3 + $0x38] sm:$0xff]  }
 0x111   :  { %1945 = vmatprep.subr.bf16.mxu1 %v2111_v18  ;;  %1933 = vmatprep.subr.bf16.mxu0 %v2111_v18 }
 0x113   :  { %1097 = vmatmul.mubr.bf16.vlgmr.msra.gmra.mrb[12].mxu0 %v460_v63  ;;  %1138 = vmatmul.mubr.bf16.vlgmr.msra.gmra.mrb[12].mxu1 %v462_v3 }
 0x114   :  { %1946 = vmatpush3.bf16.msra.mxu1 %v2067_v19  ;;  %1947 = vmatprep.mubr.msk.bf16.mxu1 %vm2112_vm1, %v2111_v18 }
 0x115   :  { %1941 = vmatprep.mubr.msk.bf16.mxu0 %vm2112_vm1, %v2111_v18  ;;  %1951 = vmatprep.subr.bf16.mxu1 %v2111_v18 }
 0x116   :  { %1934 = vmatpush3.bf16.msra.mxu0 %v2068_v20 }
 0x117   :  { %1935 = vmatprep.subr.bf16.mxu0 %v2111_v18 }
 0x11a   :  { %1936 = vmatpush3.bf16.msra.mxu0 %v2069_v38 }
 0x11b   :  { %1937 = vmatprep.subr.bf16.mxu0 %v2111_v18 }
 0x11e   :  { %1938 = vmatpush3.bf16.msra.mxu0 %v2070_v42 }
 0x11f   :  { %1939 = vmatprep.subr.bf16.mxu0 %v2111_v18 }
 0x122   :  { %1940 = vmatpush3.bf16.msra.mxu0 %v2071_v53 }
 0x123   :  { %1963 = vmatprep.subr.bf16.mxu0 %v2111_v18 }
 0x1c6   :  { %v1836_v21 = vpop.f32.mrb[8].mxu0  ;;  %v1858_v23 = vpop.f32.mrb[8].mxu1 }
 0x1c7   :  { %v1837_v24 = vpop.f32.mrb[9].mxu0  ;;  %v1859_v26 = vpop.f32.mrb[9].mxu1 }
 0x1c8   :  { %v1838_v25 = vadd.f32 %v1837_v24, %v1836_v21  ;;  %v1839_v27 = vpop.f32.mrb[10].mxu0  ;;  %v1860_v28 = vadd.f32 %v1859_v26, %v1858_v23  ;;  %v1861_v29 = vpop.f32.mrb[10].mxu1 }
 0x1c9   :  { %v1840_v30 = vpop.f32.mrb[11].mxu0  ;;  %v1862_v33 = vpop.f32.mrb[11].mxu1 }
 0x1ca   :  { %v1017_v31 = vadd.f32 %v1838_v25, %v596_v22  ;;  %v1841_v32 = vadd.f32 %v1840_v30, %v1839_v27  ;;  %v1863_v34 = vadd.f32 %v1862_v33, %v1861_v29  ;;  %v2076_v27 = vld [vmem:[%s2636_s3 + $0x48] sm:$0xff]   ;;  %v1333_v29 = vld [vmem:[%s2637_s4 + $0x3] ss:$0 sm:$0xff]  ;;  %v1249_v30 = vld [vmem:[%s2637_s4 + $0x4] ss:$0 sm:$0xff] }
 0x1cc   :  { %v1058_v35 = vadd.f32 %v1860_v28, %v1017_v31  ;;  %v1020_v36 = vadd.f32 %v1841_v32, %v596_v22  ;;  %v2077_v28 = vld [vmem:[%s2636_s3 + $0x50] sm:$0xff]   ;;  %v2078_v32 = vld [vmem:[%s2636_s3 + $0x58] sm:$0xff]  }
 0x1ce   :  { %v1061_v37 = vadd.f32 %v1863_v34, %v1020_v36 }
 0x1e6   :  { %v1880_v39 = vpop.f32.mrb[12].mxu0  ;;  %v1902_v40 = vpop.f32.mrb[12].mxu1 }
 0x1e7   :  { %v1881_v41 = vpop.f32.mrb[13].mxu0  ;;  %v1903_v44 = vpop.f32.mrb[13].mxu1 }
 0x1e8   :  { %v1882_v43 = vadd.f32 %v1881_v41, %v1880_v39  ;;  %v1883_v45 = vpop.f32.mrb[14].mxu0  ;;  %v1904_v46 = vadd.f32 %v1903_v44, %v1902_v40  ;;  %v1905_v47 = vpop.f32.mrb[14].mxu1  ;;  %v2079_v40 = vld [vmem:[%s2636_s3 + $0x60] sm:$0xff]  }
 0x1e9   :  { %v1884_v48 = vpop.f32.mrb[15].mxu0  ;;  %v1906_v51 = vpop.f32.mrb[15].mxu1 }
 0x1ea   :  { %v1099_v49 = vadd.f32 %v1882_v43, %v1058_v35  ;;  %v1885_v50 = vadd.f32 %v1884_v48, %v1883_v45  ;;  %v1907_v52 = vadd.f32 %v1906_v51, %v1905_v47 }
 0x1ec   :  { %v1140_v54 = vadd.f32 %v1904_v46, %v1099_v49  ;;  %v1102_v55 = vadd.f32 %v1885_v50, %v1061_v37 }
 0x1ee   :  { %v1146_v56 = vmax.f32 %v1140_v54, 0.0  ;;  %v1143_v57 = vadd.f32 %v1907_v52, %v1102_v55  ;;  %v1438_v52 = vld [vmem:[%s2637_s4 + $0x5] ss:$0 sm:$0xff] }
 0x1f0   :  { %v1147_v58 = vmax.f32 %v1143_v57, 0.0  ;;  %1155 = vrot.lane.b32.xlu0 %v1146_v56, %s2113_s16  ;;  %1151 = vst.msk [vmem:[#allocation2 + $0x1] sm:$0xff] %vm1150_vm3, %v1146_v56 }
 0x1f2   :  { %v1248_v59 = vpack.c.bf16 %v1147_v58, %v1146_v56  ;;  %1157 = vrot.lane.b32.xlu1 %v1147_v58, %s2113_s16  ;;  %1152 = vst.msk [vmem:[#allocation2 + $0x9] sm:$0xff] %vm1150_vm3, %v1147_v58 }
 0x1f4   :  { %1948 = vmatmul.mubr.msk.bf16.vlgmr.msra.gmra.mrb[16].mxu1 %vm1150_vm3, %v1248_v59 }
 0x1f5   :  { %1959 = vmatprep.mubr.msk.bf16.mxu1 %vm2112_vm1, %v2111_v18  ;;  %1952 = vmatpush3.bf16.msra.mxu1 %v2072_v14 }
 0x1f6   :  { %1953 = vmatprep.subr.bf16.mxu1 %v2111_v18 }
 0x1f9   :  { %1954 = vmatpush3.bf16.msra.mxu1 %v2073_v15 }
 0x1fa   :  { %1955 = vmatprep.subr.bf16.mxu1 %v2111_v18 }
 0x1fd   :  { %1956 = vmatpush3.bf16.msra.mxu1 %v2074_v16 }
 0x1fe   :  { %1957 = vmatprep.subr.bf16.mxu1 %v2111_v18 }
 0x201   :  { %1958 = vmatpush3.bf16.msra.mxu1 %v2075_v17 }
 0x202   :  { %1975 = vmatprep.subr.bf16.mxu1 %v2111_v18 }
 0x262   :  { %v1156_v60 = vpop.permute.xlu0 %1155 }
 0x263   :  { %1162 = vst.msk [vmem:[#allocation2] sm:$0xff] %vm1161_vm4, %v1156_v60 }
 0x264   :  { %v1158_v61 = vpop.permute.xlu1 %1157 }
 0x265   :  { %1163 = vst.msk [vmem:[#allocation2 + $0x8] sm:$0xff] %vm1161_vm4, %v1158_v61  ;;  %v2080_v61 = vld [vmem:[%s2636_s3 + $0x68] sm:$0xff]  }
 0x26a   :  { %v1164_v62 = vld [vmem:[#allocation2] sm:$0xff] }
 0x26b   :  { %1301 = vst.msk [vmem:[#allocation2] sm:$0x1] %vm1300_vm5, %v2111_v18 }
 0x26c   :  { %v1165_v63 = vld [vmem:[#allocation2 + $0x8] sm:$0xff] }
 0x26d   :  { %v1174_v0 = vpack.c.bf16 %v1165_v63, %v1164_v62  ;;  %v2081_v62 = vld [vmem:[%s2636_s3 + $0x70] sm:$0xff]   ;;  %v2082_v63 = vld [vmem:[%s2636_s3 + $0x78] sm:$0xff]  }
 0x26f   :  { %1942 = vmatmul.mubr.msk.bf16.vlgmr.msra.gmra.mrb[16].mxu0 %vm264_vm0, %v1174_v0  ;;  %v2083_v0 = vld [vmem:[%s2636_s3 + $0x80] sm:$0xff]  }
 0x270   :  { %1971 = vmatprep.mubr.msk.bf16.mxu0 %vm2112_vm1, %v2111_v18  ;;  %1964 = vmatpush3.bf16.msra.mxu0 %v2076_v27 }
 0x271   :  { %1965 = vmatprep.subr.bf16.mxu0 %v2111_v18 }
 0x274   :  { %1966 = vmatpush3.bf16.msra.mxu0 %v2077_v28 }
 0x275   :  { %1967 = vmatprep.subr.bf16.mxu0 %v2111_v18 }
 0x278   :  { %1968 = vmatpush3.bf16.msra.mxu0 %v2078_v32 }
 0x279   :  { %1969 = vmatprep.subr.bf16.mxu0 %v2111_v18 }
 0x27c   :  { %1970 = vmatpush3.bf16.msra.mxu0 %v2079_v40 }
 0x27d   :  { %1987 = vmatprep.subr.bf16.mxu0 %v2111_v18 }
 0x2c7   :  { %v2506_v1 = vpop.f32.mrb[16].mxu1 }
 0x2c8   :  { %v1949_v2 = vpop.f32.mrb[17].mxu1  ;;  %v1294_v36 = vadd.f32 %v2506_v1, %v1249_v30 }
 0x2c9   :  { %v2508_v3 = vpop.f32.mrb[18].mxu1 }
 0x2ca   :  { %v1950_v4 = vpop.f32.mrb[19].mxu1  ;;  %v1297_v41 = vadd.f32 %v2508_v3, %v1249_v30 }
 0x342   :  { %v1237_v6 = vpop.f32.mrb[16].mxu0 }
 0x343   :  { %v1238_v7 = vadd.f32 %v1237_v6, %v1175_v5  ;;  %v1943_v8 = vpop.f32.mrb[17].mxu0 }
 0x344   :  { %v1240_v9 = vpop.f32.mrb[18].mxu0 }
 0x345   :  { %v1244_v10 = vmax.f32 %v1238_v7, 0.0  ;;  %v1241_v11 = vadd.f32 %v1240_v9, %v1175_v5  ;;  %v1944_v12 = vpop.f32.mrb[19].mxu0  ;;  %v2084_v9 = vld [vmem:[%s2636_s3 + $0x88] sm:$0xff]  }
 0x346   :  { %v1540_v12 = vld [vmem:[%s2637_s4 + $0x6] ss:$0 sm:$0xff] }
 0x347   :  { %v1245_v13 = vmax.f32 %v1241_v11, 0.0  ;;  %1304 = vrot.lane.b32.xlu1 %v1244_v10, %s2114_s19 }
 0x349   :  { %1306 = vrot.lane.b32.xlu0 %v1245_v13, %s2114_s19 }
 0x34b   :  { %1313 = vrot.lane.b32.xlu1 %v1244_v10, %s2115_s22  ;;  %v2085_v10 = vld [vmem:[%s2636_s3 + $0x90] sm:$0xff]  }
 0x34d   :  { %1315 = vrot.lane.b32.xlu0 %v1245_v13, %s2115_s22 }
 0x3b9   :  { %v1305_v19 = vpop.permute.xlu1 %1304 }
 0x3ba   :  { %1311 = vst.msk [vmem:[#allocation2 + $0x1] sm:$0xff] %vm1310_vm6, %v1305_v19 }
 0x3bb   :  { %v1307_v20 = vpop.permute.xlu0 %1306 }
 0x3bc   :  { %1312 = vst.msk [vmem:[#allocation2 + $0x9] sm:$0xff] %vm1310_vm6, %v1307_v20 }
 0x3bd   :  { %v1314_v21 = vpop.permute.xlu1 %1313 }
 0x3be   :  { %1320 = vst.msk [vmem:[#allocation2] sm:$0xff] %vm1319_vm7, %v1314_v21 }
 0x3bf   :  { %v1316_v22 = vpop.permute.xlu0 %1315 }
 0x3c0   :  { %1321 = vst.msk [vmem:[#allocation2 + $0x8] sm:$0xff] %vm1319_vm7, %v1316_v22 }
 0x3c5   :  { %v1322_v23 = vld [vmem:[#allocation2] sm:$0xff] }
 0x3c6   :  { %1412 = vst.msk [vmem:[#allocation2] sm:$0x3] %vm1411_vm8, %v2111_v18 }
 0x3c7   :  { %v1323_v24 = vld [vmem:[#allocation2 + $0x8] sm:$0xff] }
 0x3c8   :  { %v1332_v25 = vpack.c.bf16 %v1323_v24, %v1322_v23  ;;  %v1619_v23 = vld [vmem:[%s2637_s4 + $0x7] ss:$0 sm:$0xff] }
 0x3ca   :  { %1335 = vrot.lane.b32.xlu1 %v1332_v25, %s2114_s19 }
 0x43c   :  { %v1336_v26 = vpop.permute.xlu1 %1335 }
 0x43d   :  { %1960 = vmatmul.mubr.msk.bf16.vlgmr.msra.gmra.mrb[20].mxu1 %vm264_vm0, %v1336_v26 }
 0x43e   :  { %1983 = vmatprep.mubr.msk.bf16.mxu1 %vm2112_vm1, %v2111_v18  ;;  %1976 = vmatpush3.bf16.msra.mxu1 %v2080_v61 }
 0x43f   :  { %1977 = vmatprep.subr.bf16.mxu1 %v2111_v18 }
 0x442   :  { %1978 = vmatpush3.bf16.msra.mxu1 %v2081_v62 }
 0x443   :  { %1979 = vmatprep.subr.bf16.mxu1 %v2111_v18 }
 0x446   :  { %1980 = vmatpush3.bf16.msra.mxu1 %v2082_v63 }
 0x447   :  { %1981 = vmatprep.subr.bf16.mxu1 %v2111_v18 }
 0x44a   :  { %1982 = vmatpush3.bf16.msra.mxu1 %v2083_v0 }
 0x510   :  { %v1398_v31 = vpop.f32.mrb[20].mxu1 }
 0x511   :  { %v1399_v33 = vadd.f32 %v1398_v31, %v1333_v29  ;;  %v1961_v34 = vpop.f32.mrb[21].mxu1 }
 0x512   :  { %v1401_v35 = vpop.f32.mrb[22].mxu1 }
 0x513   :  { %v1405_v37 = vmax.f32 %v1399_v33, 0.0  ;;  %v1402_v38 = vadd.f32 %v1401_v35, %v1333_v29  ;;  %v1962_v39 = vpop.f32.mrb[23].mxu1 }
 0x515   :  { %v1407_v42 = vadd.f32 %v1405_v37, %v1294_v36  ;;  %v1406_v43 = vmax.f32 %v1402_v38, 0.0 }
 0x517   :  { %v1409_v44 = vmax.f32 %v1407_v42, 0.0  ;;  %v1408_v45 = vadd.f32 %v1406_v43, %v1297_v41 }
 0x519   :  { %v2566_v46 = vmax.f32 %v1408_v45, 0.0  ;;  %1418 = vrot.lane.b32.xlu0 %v1409_v44, %s2113_s16  ;;  %1414 = vst.msk [vmem:[#allocation2 + $0x2] sm:$0xff] %vm1413_vm9, %v1409_v44 }
 0x51b   :  { %1420 = vrot.lane.b32.xlu1 %v2566_v46, %s2113_s16  ;;  %1415 = vst.msk [vmem:[#allocation2 + $0xa] sm:$0xff] %vm1413_vm9, %v2566_v46 }
 0x58b   :  { %v1419_v47 = vpop.permute.xlu0 %1418 }
 0x58c   :  { %1425 = vst.msk [vmem:[#allocation2] sm:$0xff] %vm1424_vm10, %v1419_v47 }
 0x58d   :  { %v1421_v48 = vpop.permute.xlu1 %1420 }
 0x58e   :  { %1426 = vst.msk [vmem:[#allocation2 + $0x8] sm:$0xff] %vm1424_vm10, %v1421_v48 }
 0x593   :  { %v1427_v49 = vld [vmem:[#allocation2] sm:$0xff] }
 0x594   :  { %1510 = vst.msk [vmem:[#allocation2] sm:$0x3] %vm1509_vm11, %v2111_v18 }
 0x595   :  { %v1428_v50 = vld [vmem:[#allocation2 + $0x8] sm:$0xff] }
 0x596   :  { %v1437_v51 = vpack.c.bf16 %v1428_v50, %v1427_v49 }
 0x598   :  { %1972 = vmatmul.mubr.msk.bf16.vlgmr.msra.gmra.mrb[20].mxu0 %vm264_vm0, %v1437_v51 }
 0x599   :  { %1991 = vmatprep.mubr.msk.bf16.mxu0 %vm2112_vm1, %v2111_v18  ;;  %1988 = vmatpush3.bf16.msra.mxu0 %v2084_v9 }
 0x59a   :  { %1989 = vmatprep.subr.bf16.mxu0 %v2111_v18 }
 0x59d   :  { %1990 = vmatpush3.bf16.msra.mxu0 %v2085_v10 }
 0x66b   :  { %v1500_v53 = vpop.f32.mrb[20].mxu0 }
 0x66c   :  { %v1501_v54 = vadd.f32 %v1500_v53, %v1438_v52  ;;  %v1973_v55 = vpop.f32.mrb[21].mxu0 }
 0x66d   :  { %v1503_v56 = vpop.f32.mrb[22].mxu0 }
 0x66e   :  { %v1507_v57 = vmax.f32 %v1501_v54, 0.0  ;;  %v1504_v58 = vadd.f32 %v1503_v56, %v1438_v52  ;;  %v1974_v59 = vpop.f32.mrb[23].mxu0 }
 0x670   :  { %v1508_v60 = vmax.f32 %v1504_v58, 0.0  ;;  %1513 = vrot.lane.b32.xlu0 %v1507_v57, %s2114_s19 }
 0x672   :  { %1515 = vrot.lane.b32.xlu1 %v1508_v60, %s2114_s19 }
 0x674   :  { %1521 = vrot.lane.b32.xlu0 %v1507_v57, %s2115_s22 }
 0x676   :  { %1523 = vrot.lane.b32.xlu1 %v1508_v60, %s2115_s22 }
 0x6e2   :  { %v1514_v1 = vpop.permute.xlu0 %1513 }
 0x6e3   :  { %1519 = vst.msk [vmem:[#allocation2 + $0x2] sm:$0xff] %vm1310_vm6, %v1514_v1 }
 0x6e4   :  { %v1516_v2 = vpop.permute.xlu1 %1515 }
 0x6e5   :  { %1520 = vst.msk [vmem:[#allocation2 + $0xa] sm:$0xff] %vm1310_vm6, %v1516_v2 }
 0x6e6   :  { %v1522_v3 = vpop.permute.xlu0 %1521 }
 0x6e7   :  { %1527 = vst.msk [vmem:[#allocation2] sm:$0xff] %vm1319_vm7, %v1522_v3 }
 0x6e8   :  { %v1524_v4 = vpop.permute.xlu1 %1523 }
 0x6e9   :  { %1528 = vst.msk [vmem:[#allocation2 + $0x8] sm:$0xff] %vm1319_vm7, %v1524_v4 }
 0x6ee   :  { %v1529_v5 = vld [vmem:[#allocation2] sm:$0xff] }
 0x6f0   :  { %v1530_v6 = vld [vmem:[#allocation2 + $0x8] sm:$0xff] }
 0x6f1   :  { %v1539_v7 = vpack.c.bf16 %v1530_v6, %v1529_v5 }
 0x6f3   :  { %1542 = vrot.lane.b32.xlu0 %v1539_v7, %s2114_s19 }
 0x765   :  { %v1543_v8 = vpop.permute.xlu0 %1542 }
 0x766   :  { %1984 = vmatmul.mubr.msk.bf16.vlgmr.msra.gmra.mrb[24].mxu1 %vm264_vm0, %v1543_v8 }
 0x839   :  { %v1605_v11 = vpop.f32.mrb[24].mxu1 }
 0x83a   :  { %v1985_v13 = vpop.f32.mrb[25].mxu1 }
 0x83b   :  { %v1607_v14 = vpop.f32.mrb[26].mxu1 }
 0x83c   :  { %v1608_v15 = vadd.f32 %v1607_v14, %v1540_v12  ;;  %v1986_v16 = vpop.f32.mrb[27].mxu1 }
 0x83e   :  { %v1611_v17 = vmax.f32 %v1608_v15, 0.0 }
 0x840   :  { %v1612_v19 = vadd.f32 %v1611_v17, %v2566_v46 }
 0x842   :  { %v1613_v20 = vmax.f32 %v1612_v19, 0.0 }
 0x844   :  { %v1618_v21 = vpack.c.bf16 %v1613_v20, %v1613_v20 }
 0x846   :  { %v1621_v18 = vshrl.u32 %v1618_v21, 16 }
 0x848   :  { %v1623_v22 = vrot.slane %v1621_v18, 3 }
 0x84a   :  { %1992 = vmatmul.mubr.msk.bf16.vlgmr.msra.gmra.mrb[24].mxu0 %vm1413_vm9, %v1623_v22 }
 0x91d   :  { %v1673_v24 = vpop.f32.mrb[24].mxu0 }
 0x91e   :  { %v1674_v25 = vadd.f32 %v1673_v24, %v1619_v23  ;;  %v1993_v26 = vpop.f32.mrb[25].mxu0 }
 0x91f   :  { %v1676_v27 = vpop.f32.mrb[26].mxu0 }
 0x920   :  { %v1994_v28 = vpop.f32.mrb[27].mxu0  ;;  %1680 = vst.msk [vmem:[#allocation3] sm:$0x1] %vm1679_vm12, %v1674_v25 }
 0x921   :  { %2097 = shalt.err (!%p2094_p4)
}
 0x922   :  { %s2098_s10 = scalar_lea.hbm %s2638_s5, 16 }
 0x923   :  { %p2099_p5 = scmp.ne.s32.totalorder %s2638_s5, %s2098_s10  ;;  %p2102_p6 = scmp.lt.u32.totalorder %s2098_s10, %s2638_s5 }
 0x925   :  { %p2104_p7 = pnand %p2102_p6, %p2099_p5 }
 0x927   :  { %2107 = shalt.err (!%p2104_p7)
}
 0x928   :  { %1690 = dma.vmem_to_hbm [thread:$0]  %s1688_s6, 16, %s2638_s5, [#allocation4]  }
 0x929   :  { %2108 = dma.done.wait [#allocation4], 16  }
 0x92a   :  { %2109 = vsyncadd [#allocation4], 4294967280 }
 0x92b   :  { %1694 = vsyncpa [#allocation4], 1 }

</bundles_post_ra>
